<compile_context>
chip_gen: v7x
topology: tpu7x:2x2x1
jax: 0.10.0
libtpu: 0.0.40
codegen_flags: <defaults>
</compile_context>

<pallas_src>
import jax
import jax.numpy as jnp
from jax.experimental import pallas as pl
from jax.experimental.pallas import tpu as pltpu


def _angle_resnet_layer_kernel(a_ref, w1_ref, b1_ref, w2_ref, b2_ref, o_ref):
    # a_ref/o_ref: (TILE_N, c_eff)   w*_ref: (c_eff, c_eff)   b*_ref: (1, c_eff) f32
    a = a_ref[...]
    x = jnp.maximum(a, 0.0)                                   # relu(a), storage dtype
    h = jnp.dot(x, w1_ref[...], preferred_element_type=jnp.float32)
    h = jnp.maximum(h + b1_ref[...], 0.0)                     # linear_1 + relu (f32)
    h = h.astype(w2_ref.dtype)                                # MXU-native operand
    y = jnp.dot(h, w2_ref[...], preferred_element_type=jnp.float32)
    y = y + b2_ref[...]                                       # linear_2 bias (f32)
    o_ref[...] = (a.astype(jnp.float32) + y).astype(o_ref.dtype)   # residual add


def _round_up(x, m):
    return (x + m - 1) // m * m


def _round_down(x, m):
    return (x // m) * m


def _block_diag(w, f):
    """f copies of w (c, c) placed on the diagonal of an (f*c, f*c) matrix."""
    c = w.shape[0]
    out = jnp.zeros((f * c, f * c), w.dtype)
    for i in range(f):
        out = out.at[i * c:(i + 1) * c, i * c:(i + 1) * c].set(w)
    return out


def prepare_params(w1, b1, w2, b2):
    """One-time parameter prep.

    PyTorch (out, in) weights -> (in, out); biases -> (1, c) in f32.  When c
    divides 128 also builds the lane-folded block-diagonal (128, 128) weights
    and (1, 128) tiled biases used by the lane-dense fast path.
    """
    c = w1.shape[0]
    w1_t = jnp.transpose(w1)
    w2_t = jnp.transpose(w2)
    b1_r = b1.reshape(1, c).astype(jnp.float32)
    b2_r = b2.reshape(1, c).astype(jnp.float32)
    if 128 % c == 0 and c < 128:
        f = 128 // c
        w1_f = _block_diag(w1_t, f)
        w2_f = _block_diag(w2_t, f)
        b1_f = jnp.tile(b1_r, (1, f))
        b2_f = jnp.tile(b2_r, (1, f))
    else:
        w1_f, w2_f, b1_f, b2_f = w1_t, w2_t, b1_r, b2_r
    return dict(w1_t=w1_t, b1=b1_r, w2_t=w2_t, b2=b2_r,
                w1_f=w1_f, b1_f=b1_f, w2_f=w2_f, b2_f=b2_f)


_TARGET_TILE_BYTES = 2 << 20   # ~2 MiB of streamed activation per grid step


@jax.jit
def _angle_resnet_layer_impl(a, params):
    orig_shape = a.shape
    c = orig_shape[-1]
    a2d = a.reshape(-1, c)
    n = a2d.shape[0]

    # Lane-fold (N, c) -> (N/f, 128) when c | 128 and f | N (static, no-copy).
    fold = 128 // c if (128 % c == 0 and c < 128) else 1
    if fold > 1 and n % fold == 0:
        a2d = a2d.reshape(n // fold, c * fold)
        w1, b1, w2, b2 = params["w1_f"], params["b1_f"], params["w2_f"], params["b2_f"]
    else:
        w1, b1, w2, b2 = params["w1_t"], params["b1"], params["w2_t"], params["b2"]

    n_rows, c_eff = a2d.shape
    itemsize = a2d.dtype.itemsize
    sub = max(8, 32 // itemsize)            # sublane multiple: 8 f32, 16 bf16

    # Row tile sized by bytes, not a fixed row count.
    tile_n = _TARGET_TILE_BYTES // (c_eff * itemsize)
    tile_n = _round_down(min(max(tile_n, 512), 8192), sub)
    # Keep >= 2 grid steps when there is enough work (v7x megacore + pipelining).
    if n_rows >= 4 * sub:
        tile_n = min(tile_n, _round_up(pl.cdiv(n_rows, 2), sub))
    if tile_n >= n_rows:
        tile_n = n_rows                     # single block == full array dim
    grid = (pl.cdiv(n_rows, tile_n),)       # ragged last block handled by Pallas

    w_bytes = c_eff * c_eff * w1.dtype.itemsize
    vmem_limit = int(
        2 * 2 * tile_n * c_eff * itemsize   # in + out tiles, double-buffered
        + 2 * 2 * (w_bytes + c_eff * 4)     # resident weights + biases
        + 4 * tile_n * c_eff * 4            # f32 intermediates / spill headroom
        + (2 << 20)                         # headroom
    )
    vmem_limit = min(max(vmem_limit, 4 << 20), 48 << 20)   # <= 48 MiB (v7x: 64 MiB/TC)

    cost = pl.CostEstimate(
        flops=4 * n_rows * c_eff * c_eff,                  # two (N,c)x(c,c) matmuls
        transcendentals=0,
        bytes_accessed=2 * n_rows * c_eff * itemsize + 2 * w_bytes + 2 * c_eff * 4,
    )

    out = pl.pallas_call(
        _angle_resnet_layer_kernel,
        out_shape=jax.ShapeDtypeStruct((n_rows, c_eff), a.dtype),
        grid=grid,
        in_specs=[
            pl.BlockSpec((tile_n, c_eff), lambda i: (i, 0)),   # a        (streamed)
            pl.BlockSpec((c_eff, c_eff), lambda i: (0, 0)),    # W1^T     (resident)
            pl.BlockSpec((1, c_eff), lambda i: (0, 0)),        # b1       (resident)
            pl.BlockSpec((c_eff, c_eff), lambda i: (0, 0)),    # W2^T     (resident)
            pl.BlockSpec((1, c_eff), lambda i: (0, 0)),        # b2       (resident)
        ],
        out_specs=pl.BlockSpec((tile_n, c_eff), lambda i: (i, 0)),
        input_output_aliases={0: 0},
        compiler_params=pltpu.CompilerParams(
            dimension_semantics=("parallel",),
            vmem_limit_bytes=vmem_limit,
        ),
        cost_estimate=cost,
    )(a2d, w1, b1, w2, b2)

    return out.reshape(orig_shape)


def angle_resnet_layer(a, params):
    """a: (..., c). params: output of prepare_params(w1, b1, w2, b2)."""
    return _angle_resnet_layer_impl(a, params)


def _reference(a, w1, b1, w2, b2):
    x = jnp.maximum(a, 0.0)
    h = jnp.maximum(x @ w1.T + b1, 0.0)
    y = h @ w2.T + b2
    return a + y


if __name__ == "__main__":
    key = jax.random.PRNGKey(0)
    batch, seq, c = 2, 8, 32  # small shapes consistent with the module (c = hidden)

    k_a, k_w1, k_b1, k_w2, k_b2 = jax.random.split(key, 5)
    a = jax.random.normal(k_a, (batch, seq, c), dtype=jnp.float32)

    # Deterministic parameter init (mimic nn.Linear uniform(-1/sqrt(c), 1/sqrt(c))).
    bound = 1.0 / (c ** 0.5)
    w1 = jax.random.uniform(k_w1, (c, c), jnp.float32, -bound, bound)
    b1 = jax.random.uniform(k_b1, (c,), jnp.float32, -bound, bound)
    w2 = jax.random.uniform(k_w2, (c, c), jnp.float32, -bound, bound)
    b2 = jax.random.uniform(k_b2, (c,), jnp.float32, -bound, bound)

    params = prepare_params(w1, b1, w2, b2)   # one-time: transpose/fold weights, biases

    out = angle_resnet_layer(a, params)
    out = jax.block_until_ready(out)

    ref = _reference(a, w1, b1, w2, b2)
    assert out.shape == a.shape and out.dtype == a.dtype
    assert jnp.allclose(out, ref, atol=1e-5, rtol=1e-5), "mismatch vs reference"

    print("KERNEL_OK")
</pallas_src>

<mosaic_0001>
module attributes {stable_mosaic.version = 11 : i64} {
  func.func @_angle_resnet_layer_kernel(%arg0: i32, %arg1: memref<4x128xf32, #tpu.memory_space<vmem>>, %arg2: memref<128x128xf32, #tpu.memory_space<vmem>>, %arg3: memref<1x128xf32, #tpu.memory_space<vmem>>, %arg4: memref<128x128xf32, #tpu.memory_space<vmem>>, %arg5: memref<1x128xf32, #tpu.memory_space<vmem>>, %arg6: memref<4x128xf32, #tpu.memory_space<vmem>>) attributes {dimension_semantics = [#tpu.dimension_semantics<parallel>], iteration_bounds = array<i64: 1>, scalar_prefetch = 0 : i64, scratch_operands = 0 : i64, tpu.core_type = #tpu.core_type<tc>, window_params = [{transform_indices = @transform_0, window_bounds = array<i64: 4, 128>}, {pipeline_mode = #tpu.pipeline_mode<synchronous>, transform_indices = @transform_1, window_bounds = array<i64: 128, 128>}, {pipeline_mode = #tpu.pipeline_mode<synchronous>, transform_indices = @transform_2, window_bounds = array<i64: 1, 128>}, {pipeline_mode = #tpu.pipeline_mode<synchronous>, transform_indices = @transform_3, window_bounds = array<i64: 128, 128>}, {pipeline_mode = #tpu.pipeline_mode<synchronous>, transform_indices = @transform_4, window_bounds = array<i64: 1, 128>}, {transform_indices = @transform_5, window_bounds = array<i64: 4, 128>}]} {
    %c0 = arith.constant 0 : index
    %c0_0 = arith.constant 0 : index
    %0 = vector.load %arg1[%c0, %c0_0] : memref<4x128xf32, #tpu.memory_space<vmem>>, vector<4x128xf32>
    %cst = arith.constant 0.000000e+00 : f32
    %1 = vector.broadcast %cst : f32 to vector<4x128xf32>
    %2 = arith.maximumf %0, %1 : vector<4x128xf32>
    %c0_1 = arith.constant 0 : index
    %c0_2 = arith.constant 0 : index
    %3 = vector.load %arg2[%c0_1, %c0_2] : memref<128x128xf32, #tpu.memory_space<vmem>>, vector<128x128xf32>
    %cst_3 = arith.constant dense<0.000000e+00> : vector<4x128xf32>
    %4 = tpu.matmul %2, %3, %cst_3 {dimension_numbers = #tpu.dot_dimension_numbers<[1], [0], [0], [1], [0, 0, 1, 1], [], []>} : vector<4x128xf32>, vector<128x128xf32>, vector<4x128xf32> -> vector<4x128xf32>
    %c0_4 = arith.constant 0 : index
    %c0_5 = arith.constant 0 : index
    %5 = vector.load %arg3[%c0_4, %c0_5] : memref<1x128xf32, #tpu.memory_space<vmem>>, vector<1x128xf32>
    %6 = vector.broadcast %5 : vector<1x128xf32> to vector<4x128xf32>
    %7 = arith.addf %4, %6 : vector<4x128xf32>
    %cst_6 = arith.constant 0.000000e+00 : f32
    %8 = vector.broadcast %cst_6 : f32 to vector<4x128xf32>
    %9 = arith.maximumf %7, %8 : vector<4x128xf32>
    %c0_7 = arith.constant 0 : index
    %c0_8 = arith.constant 0 : index
    %10 = vector.load %arg4[%c0_7, %c0_8] : memref<128x128xf32, #tpu.memory_space<vmem>>, vector<128x128xf32>
    %cst_9 = arith.constant dense<0.000000e+00> : vector<4x128xf32>
    %11 = tpu.matmul %9, %10, %cst_9 {dimension_numbers = #tpu.dot_dimension_numbers<[1], [0], [0], [1], [0, 0, 1, 1], [], []>} : vector<4x128xf32>, vector<128x128xf32>, vector<4x128xf32> -> vector<4x128xf32>
    %c0_10 = arith.constant 0 : index
    %c0_11 = arith.constant 0 : index
    %12 = vector.load %arg5[%c0_10, %c0_11] : memref<1x128xf32, #tpu.memory_space<vmem>>, vector<1x128xf32>
    %13 = vector.broadcast %12 : vector<1x128xf32> to vector<4x128xf32>
    %14 = arith.addf %11, %13 : vector<4x128xf32>
    %15 = arith.addf %0, %14 : vector<4x128xf32>
    %c0_12 = arith.constant 0 : index
    %c0_13 = arith.constant 0 : index
    %16 = vector.load %arg6[%c0_12, %c0_13] : memref<4x128xf32, #tpu.memory_space<vmem>>, vector<4x128xf32>
    tpu.vector_store %arg6[%c0_12, %c0_13], %15 {strides = array<i32>} : memref<4x128xf32, #tpu.memory_space<vmem>>, vector<4x128xf32>,
    return
  }
  func.func @transform_0(%arg0: i32) -> (i32, i32) {
    %c0_i32 = arith.constant 0 : i32
    %c0_i32_0 = arith.constant 0 : i32
    return %arg0, %c0_i32 : i32, i32
  }
  func.func @transform_1(%arg0: i32) -> (i32, i32) {
    %c0_i32 = arith.constant 0 : i32
    %c0_i32_0 = arith.constant 0 : i32
    %c0_i32_1 = arith.constant 0 : i32
    return %c0_i32, %c0_i32_0 : i32, i32
  }
  func.func @transform_2(%arg0: i32) -> (i32, i32) {
    %c0_i32 = arith.constant 0 : i32
    %c0_i32_0 = arith.constant 0 : i32
    %c0_i32_1 = arith.constant 0 : i32
    return %c0_i32, %c0_i32_0 : i32, i32
  }
  func.func @transform_3(%arg0: i32) -> (i32, i32) {
    %c0_i32 = arith.constant 0 : i32
    %c0_i32_0 = arith.constant 0 : i32
    %c0_i32_1 = arith.constant 0 : i32
    return %c0_i32, %c0_i32_0 : i32, i32
  }
  func.func @transform_4(%arg0: i32) -> (i32, i32) {
    %c0_i32 = arith.constant 0 : i32
    %c0_i32_0 = arith.constant 0 : i32
    %c0_i32_1 = arith.constant 0 : i32
    return %c0_i32, %c0_i32_0 : i32, i32
  }
  func.func @transform_5(%arg0: i32) -> (i32, i32) {
    %c0_i32 = arith.constant 0 : i32
    %c0_i32_0 = arith.constant 0 : i32
    return %arg0, %c0_i32 : i32, i32
  }
}

</mosaic_0001>

<bundles_post_ra>
// kernel: _angle_resnet_layer_impl.1
= control target key start
LH: loop header
LB: loop body
LE: loop exit
PB: predicated region body
PF: predicated region fallthrough
CT: control target
= control target key end

     0   :  { %10 = vsyncpa [#allocation3], 0  ;;  %s543_s0 = inlined_call_operand.vmem [shape: f32[4,128], index: 0, kind: input, shape index: {}, may-alias: {0,5}]   ;;  %s544_s1 = inlined_call_operand.hbm [shape: f32[128,128], index: 1, kind: input, shape index: {}]   ;;  %s545_s2 = inlined_call_operand.vmem [shape: f32[1,128], index: 2, kind: input, shape index: {}]   ;;  %s546_s3 = inlined_call_operand.hbm [shape: f32[128,128], index: 3, kind: input, shape index: {}]   ;;  %s547_s4 = inlined_call_operand.vmem [shape: f32[1,128], index: 4, kind: input, shape index: {}]   ;;  %s548_s5 = inlined_call_operand.vmem [shape: f32[4,128], index: 5, kind: output, shape index: {}, may-alias: {0,5}]  }
   0x1   :  { %11 = vsyncpa [#allocation5], 0  ;;  %s454_s18 = smov [#allocation2]   ;;  %s406_s22 = scalar_lea.hbm %s544_s1, 2048 }
   0x2   :  { %s19_s19 = sshll.u32 %s454_s18, 4  ;;  %p407_p0 = scmp.ne.s32.totalorder %s544_s1, %s406_s22  ;;  %s20_s19 = int_to_ptr.vmem [resolvable:$true] %s19_s19 }
   0x3   :  { %p410_p1 = scmp.lt.u32.totalorder %s406_s22, %s544_s1 }
   0x5   :  { %p412_p2 = pnand %p410_p1, %p407_p0 }
   0x7   :  { %415 = shalt.err (!%p412_p2)
}
   0x8   :  { %s416_s27 = scalar_lea.vmem %s20_s19, 2048  ;;  %p421_p4 = scmp.lt.s32.totalorder %s20_s19, %s20_s19 }
   0x9   :  { %p417_p3 = scmp.ne.s32.totalorder %s20_s19, %s416_s27  ;;  %p422_p5 = scmp.lt.s32.totalorder %s416_s27, %s416_s27 }
   0xb   :  { %p423_p6 = por %p422_p5, %p421_p4 }
   0xd   :  { %p424_p7 = pnand %p423_p6, %p417_p3 }
   0xf   :  { %427 = shalt.err (!%p424_p7)
}
  0x10   :  { %s455_s28 = smov 128   ;;  %s456_s29 = smov 8  }
  0x11   :  { %25 = dma.hbm_to_vmem [thread:$0]  %s544_s1, 2048, %s20_s19, [#allocation3], %s455_s28, %s455_s28, %s456_s29  }
  0x12   :  { %s457_s7 = smov [#allocation4]   ;;  %s428_s11 = scalar_lea.hbm %s546_s3, 2048 }
  0x13   :  { %s33_s8 = sshll.u32 %s457_s7, 4  ;;  %p429_p8 = scmp.ne.s32.totalorder %s546_s3, %s428_s11  ;;  %s34_s8 = int_to_ptr.vmem [resolvable:$true] %s33_s8 }
  0x14   :  { %p432_p9 = scmp.lt.u32.totalorder %s428_s11, %s546_s3 }
  0x16   :  { %p434_p10 = pnand %p432_p9, %p429_p8 }
  0x18   :  { %437 = shalt.err (!%p434_p10)
}
  0x19   :  { %s438_s16 = scalar_lea.vmem %s34_s8, 2048  ;;  %p443_p12 = scmp.lt.s32.totalorder %s34_s8, %s34_s8 }
  0x1a   :  { %p439_p11 = scmp.ne.s32.totalorder %s34_s8, %s438_s16  ;;  %p444_p13 = scmp.lt.s32.totalorder %s438_s16, %s438_s16 }
  0x1c   :  { %p445_p0 = por %p444_p13, %p443_p12 }
  0x1e   :  { %p446_p1 = pnand %p445_p0, %p439_p11 }
  0x20   :  { %449 = shalt.err (!%p446_p1)
}
  0x21   :  { %39 = dma.hbm_to_vmem [thread:$0]  %s546_s3, 2048, %s34_s8, [#allocation5], %s455_s28, %s455_s28, %s456_s29  }
  0x22   :  { %450 = dma.done.wait [#allocation3], 2048  }
  0x23   :  { %451 = vsyncadd [#allocation3], 4294965248 }
  0x24   :  { %452 = dma.done.wait [#allocation5], 2048  }
  0x25   :  { %453 = vsyncadd [#allocation5], 4294965248  ;;  %v458_v0 = vmov 0.0|0.0   ;;  %vm459_vm0 = vmmov 0   ;;  %v460_v1 = vmov 0.0   ;;  %v50_v2 = vld [vmem:[#allocation2] sm:$0xff] }
  0x26   :  { %351 = vmatprep.subr.bf16.mxu0 %v458_v0  ;;  %313 = vmatprep.mubr.msk.f32.mxu0 %vm459_vm0, %v460_v1  ;;  %v51_v3 = vld [vmem:[#allocation2 + $0x8] sm:$0xff]  ;;  %v52_v4 = vld [vmem:[#allocation2 + $0x10] sm:$0xff]  ;;  %v53_v6 = vld [vmem:[#allocation2 + $0x18] sm:$0xff] }
  0x27   :  { %375 = vmatprep.subr.bf16.mxu1 %v458_v0  ;;  %348 = vmatprep.mubr.msk.f32.mxu1 %vm459_vm0, %v460_v1  ;;  %v352_v5 = vpack.c.bf16 %v51_v3, %v50_v2  ;;  %v355_v7 = vpack.c.bf16 %v53_v6, %v52_v4  ;;  %v54_v8 = vld [vmem:[#allocation2 + $0x20] sm:$0xff]  ;;  %v55_v9 = vld [vmem:[#allocation2 + $0x28] sm:$0xff]  ;;  %v146_v12 = vld [vmem:[#allocation4 + $0x10] sm:$0xff] }
  0x28   :  { %v144_v10 = vld [vmem:[#allocation4] sm:$0xff]  ;;  %v145_v11 = vld [vmem:[#allocation4 + $0x8] sm:$0xff]  ;;  %v147_v13 = vld [vmem:[#allocation4 + $0x18] sm:$0xff]  ;;  %v358_v14 = vpack.c.bf16 %v55_v9, %v54_v8 }
  0x29   :  { %353 = vmatpush3.bf16.msra.mxu0 %v352_v5  ;;  %v376_v15 = vpack.c.bf16 %v145_v11, %v144_v10  ;;  %v56_v16 = vld [vmem:[#allocation2 + $0x30] sm:$0xff]  ;;  %v57_v17 = vld [vmem:[#allocation2 + $0x38] sm:$0xff]  ;;  %v379_v18 = vpack.c.bf16 %v147_v13, %v146_v12  ;;  %v148_v19 = vld [vmem:[#allocation4 + $0x20] sm:$0xff] }
  0x2a   :  { %354 = vmatprep.subr.bf16.mxu0 %v458_v0  ;;  %v149_v20 = vld [vmem:[#allocation4 + $0x28] sm:$0xff]  ;;  %v361_v21 = vpack.c.bf16 %v57_v17, %v56_v16  ;;  %v58_v22 = vld [vmem:[#allocation2 + $0x40] sm:$0xff]  ;;  %v150_v25 = vld [vmem:[#allocation4 + $0x30] sm:$0xff] }
  0x2b   :  { %377 = vmatpush3.bf16.msra.mxu1 %v376_v15  ;;  %v59_v23 = vld [vmem:[#allocation2 + $0x48] sm:$0xff]  ;;  %v382_v24 = vpack.c.bf16 %v149_v20, %v148_v19  ;;  %v151_v26 = vld [vmem:[#allocation4 + $0x38] sm:$0xff]  ;;  %v60_v28 = vld [vmem:[#allocation2 + $0x50] sm:$0xff] }
  0x2c   :  { %378 = vmatprep.subr.bf16.mxu1 %v458_v0  ;;  %v364_v27 = vpack.c.bf16 %v59_v23, %v58_v22  ;;  %v61_v29 = vld [vmem:[#allocation2 + $0x58] sm:$0xff]  ;;  %v385_v30 = vpack.c.bf16 %v151_v26, %v150_v25  ;;  %v152_v31 = vld [vmem:[#allocation4 + $0x40] sm:$0xff]  ;;  %v153_v32 = vld [vmem:[#allocation4 + $0x48] sm:$0xff] }
  0x2d   :  { %356 = vmatpush3.bf16.msra.mxu0 %v355_v7  ;;  %v367_v33 = vpack.c.bf16 %v61_v29, %v60_v28  ;;  %v62_v34 = vld [vmem:[#allocation2 + $0x60] sm:$0xff]  ;;  %v63_v35 = vld [vmem:[#allocation2 + $0x68] sm:$0xff]  ;;  %v388_v36 = vpack.c.bf16 %v153_v32, %v152_v31  ;;  %v154_v37 = vld [vmem:[#allocation4 + $0x50] sm:$0xff] }
  0x2e   :  { %357 = vmatprep.subr.bf16.mxu0 %v458_v0  ;;  %v155_v38 = vld [vmem:[#allocation4 + $0x58] sm:$0xff]  ;;  %v370_v39 = vpack.c.bf16 %v63_v35, %v62_v34  ;;  %v64_v40 = vld [vmem:[#allocation2 + $0x70] sm:$0xff]  ;;  %v156_v43 = vld [vmem:[#allocation4 + $0x60] sm:$0xff] }
  0x2f   :  { %380 = vmatpush3.bf16.msra.mxu1 %v379_v18  ;;  %v65_v41 = vld [vmem:[#allocation2 + $0x78] sm:$0xff]  ;;  %v391_v42 = vpack.c.bf16 %v155_v38, %v154_v37  ;;  %v157_v44 = vld [vmem:[#allocation4 + $0x68] sm:$0xff]  ;;  %v158_v49 = vld [vmem:[#allocation4 + $0x70] sm:$0xff] }
  0x30   :  { %381 = vmatprep.subr.bf16.mxu1 %v458_v0  ;;  %v373_v45 = vpack.c.bf16 %v65_v41, %v64_v40  ;;  %v48_v46 = vld [vmem:[%s543_s0] sm:$0xf]  ;;  %v394_v47 = vpack.c.bf16 %v157_v44, %v156_v43 }
  0x31   :  { %359 = vmatpush3.bf16.msra.mxu0 %v358_v14  ;;  %v49_v48 = vmax.f32 %v48_v46, 0.0  ;;  %v159_v50 = vld [vmem:[#allocation4 + $0x78] sm:$0xff] }
  0x32   :  { %360 = vmatprep.subr.bf16.mxu0 %v458_v0  ;;  %v397_v51 = vpack.c.bf16 %v159_v50, %v158_v49  ;;  %v245_v52 = vld [vmem:[%s545_s2] ss:$0 sm:$0xff] }
  0x33   :  { %383 = vmatpush3.bf16.msra.mxu1 %v382_v24  ;;  %v246_v57 = vld [vmem:[%s547_s4] ss:$0 sm:$0xff] }
  0x34   :  { %384 = vmatprep.subr.bf16.mxu1 %v458_v0 }
  0x35   :  { %362 = vmatpush3.bf16.msra.mxu0 %v361_v21 }
  0x36   :  { %363 = vmatprep.subr.bf16.mxu0 %v458_v0 }
  0x37   :  { %386 = vmatpush3.bf16.msra.mxu1 %v385_v30 }
  0x38   :  { %387 = vmatprep.subr.bf16.mxu1 %v458_v0 }
  0x39   :  { %365 = vmatpush3.bf16.msra.mxu0 %v364_v27 }
  0x3a   :  { %366 = vmatprep.subr.bf16.mxu0 %v458_v0 }
  0x3b   :  { %389 = vmatpush3.bf16.msra.mxu1 %v388_v36 }
  0x3c   :  { %390 = vmatprep.subr.bf16.mxu1 %v458_v0 }
  0x3d   :  { %368 = vmatpush3.bf16.msra.mxu0 %v367_v33 }
  0x3e   :  { %369 = vmatprep.subr.bf16.mxu0 %v458_v0 }
  0x3f   :  { %392 = vmatpush3.bf16.msra.mxu1 %v391_v42 }
  0x40   :  { %393 = vmatprep.subr.bf16.mxu1 %v458_v0 }
  0x41   :  { %371 = vmatpush3.bf16.msra.mxu0 %v370_v39 }
  0x42   :  { %372 = vmatprep.subr.bf16.mxu0 %v458_v0 }
  0x43   :  { %395 = vmatpush3.bf16.msra.mxu1 %v394_v47 }
  0x44   :  { %396 = vmatprep.subr.bf16.mxu1 %v458_v0 }
  0x45   :  { %374 = vmatpush3.bf16.msra.mxu0 %v373_v45 }
  0x47   :  { %398 = vmatpush3.bf16.msra.mxu1 %v397_v51 }
  0x48   :  { %314 = vmatmul.mubr.f32.vlgmr.msra.gmra.mrb[0].mxu0 %v49_v48 }
 0x11b   :  { %v139_v53 = vpop.f32.mrb[0].mxu0 }
 0x11c   :  { %v140_v54 = vadd.f32 %v245_v52, %v139_v53  ;;  %v315_v55 = vpop.f32.mrb[1].mxu0 }
 0x11e   :  { %v143_v56 = vmax.f32 %v140_v54, 0.0 }
 0x120   :  { %349 = vmatmul.mubr.f32.vlgmr.msra.gmra.mrb[0].mxu1 %v143_v56 }
 0x1f3   :  { %v233_v58 = vpop.f32.mrb[0].mxu1 }
 0x1f4   :  { %v234_v59 = vadd.f32 %v246_v57, %v233_v58  ;;  %v350_v60 = vpop.f32.mrb[1].mxu1 }
 0x1f6   :  { %v237_v61 = vadd.f32 %v234_v59, %v48_v46 }
 0x1f8   :  { %238 = vst [vmem:[%s548_s5] sm:$0xf] %v237_v61 }
 0x1f9   :  { %243 = vsyncpa [#allocation3], 1 }
 0x1fa   :  { %244 = vsyncpa [#allocation5], 1 }

</bundles_post_ra>
